<compile_context>
chip_gen: v7x
topology: tpu7x:2x2x1
jax: 0.10.0
libtpu: 0.0.40
codegen_flags: <defaults>
</compile_context>

<pallas_src>
import jax
import jax.numpy as jnp
from jax.experimental import pallas as pl
from jax.experimental.pallas import tpu as pltpu

_LANE = 128
_MAX_BLOCK_BYTES = 4 << 20  # per-stream block ceiling


# --------------------------------------------------------------------------- #
# Kernels
# --------------------------------------------------------------------------- #
def _mh_kernel_weighted(delta_ref, x_ref, y_ref, w_ref, o_ref):
    d0 = delta_ref[0]
    x = x_ref[...].astype(jnp.float32)
    y = y_ref[...].astype(jnp.float32)
    w = w_ref[...].astype(jnp.float32)
    r = jnp.abs(x - y)
    d = w * d0
    loss = jnp.where(r < d, 0.5 * r * r, d * (r - 0.5 * d))
    o_ref[...] = loss.astype(o_ref.dtype)


def _mh_kernel_noweight(delta_ref, x_ref, y_ref, o_ref):
    d = delta_ref[0]
    x = x_ref[...].astype(jnp.float32)
    y = y_ref[...].astype(jnp.float32)
    r = jnp.abs(x - y)
    loss = jnp.where(r < d, 0.5 * r * r, d * (r - 0.5 * d))
    o_ref[...] = loss.astype(o_ref.dtype)


# --------------------------------------------------------------------------- #
# Tiling helpers
# --------------------------------------------------------------------------- #
def _cdiv(a, b):
    return -(-a // b)


def _round_up(n, m):
    return _cdiv(n, m) * m


def _min_sublanes(dtype):
    # f32 -> 8, bf16 -> 16, int8/fp8 -> 32
    return max(8, 32 // jnp.dtype(dtype).itemsize)


def _vmem_capacity_bytes():
    try:
        cap = int(getattr(pltpu.get_tpu_info(), "vmem_capacity_bytes", 0))
        if cap > 0:
            return cap
    except Exception:
        pass
    return 64 << 20  # conservative (v7x-sized) fallback


def _plan_tiles(rows, sub, n_streams, max_itemsize):
    """Pick (tile_rows, grid, vmem_limit_bytes) for a (rows, 128) slab."""
    vmem_cap = _vmem_capacity_bytes()
    # Budget ~half of physical VMEM across double-buffered streams.
    per_stream = (vmem_cap // 2) // (2 * n_streams)
    block_bytes = min(_MAX_BLOCK_BYTES, max(1 << 20, per_stream))
    max_tile_rows = max(sub, (block_bytes // (_LANE * max_itemsize)) // sub * sub)

    # Near-equal split; keep >= 2 tiles when possible so the v7x megacore
    # ("parallel" grid axis) has work for both TensorCores.
    min_tiles = 2 if rows > sub else 1
    n_tiles = max(min_tiles, _cdiv(rows, max_tile_rows))
    tile_rows = max(sub, _round_up(_cdiv(rows, n_tiles), sub))
    if tile_rows >= rows:
        tile_rows = rows  # single block equal to the full slab (always legal)
    grid = _cdiv(rows, tile_rows)

    footprint = n_streams * 2 * tile_rows * _LANE * max_itemsize
    vmem_limit = int(min(vmem_cap, max(32 << 20, footprint + (16 << 20))))
    return tile_rows, grid, vmem_limit


# --------------------------------------------------------------------------- #
# Public wrapper
# --------------------------------------------------------------------------- #
def modified_huber(x, y, weights=None, *, base_delta=1.0):
    """Pallas implementation of ModifiedHuber.forward (output dtype = x.dtype)."""
    x = jnp.asarray(x)
    y = jnp.asarray(y)
    orig_shape = x.shape
    out_dtype = x.dtype
    total = int(x.size)
    if total == 0:
        return jnp.zeros(orig_shape, out_dtype)

    # Scalar / size-1 weights fold into delta (no third HBM stream);
    # full-shape weights stream through the weighted kernel.
    delta = jnp.float32(base_delta)
    w_arr = None
    if weights is not None:
        w = jnp.asarray(weights)
        if w.size == 1:
            delta = delta * w.reshape(()).astype(jnp.float32)
        else:
            w_arr = jnp.broadcast_to(w, orig_shape)
    delta_arr = jnp.reshape(delta, (1,)).astype(jnp.float32)

    streams = [x, y] + ([w_arr] if w_arr is not None else [])
    n_streams = len(streams) + 1  # + output
    sub = max(max(_min_sublanes(a.dtype) for a in streams),
              _min_sublanes(out_dtype))
    max_item = max(max(jnp.dtype(a.dtype).itemsize for a in streams),
                   jnp.dtype(out_dtype).itemsize)

    # Pad the flat length only up to the next lane multiple (< 128 elements).
    # Ragged rows inside the last tile are handled by Pallas partial blocks,
    # so no full-tile padding / full-array copies are needed.
    pad = (-total) % _LANE
    padded_total = total + pad
    rows = padded_total // _LANE

    def to_slab(a):
        a = a.reshape(-1)
        if pad:
            a = jnp.pad(a, (0, pad))
        return a.reshape(rows, _LANE)

    slabs = [to_slab(a) for a in streams]

    tile_rows, grid, vmem_limit = _plan_tiles(rows, sub, n_streams, max_item)

    spec = pl.BlockSpec((tile_rows, _LANE), lambda i: (i, 0))
    smem_spec = pl.BlockSpec(memory_space=pltpu.MemorySpace.SMEM)
    kernel = _mh_kernel_weighted if w_arr is not None else _mh_kernel_noweight

    bytes_accessed = int(sum(a.size * jnp.dtype(a.dtype).itemsize for a in slabs)
                         + padded_total * jnp.dtype(out_dtype).itemsize)
    cost = pl.CostEstimate(flops=7 * padded_total, transcendentals=0,
                           bytes_accessed=bytes_accessed)

    out = pl.pallas_call(
        kernel,
        out_shape=jax.ShapeDtypeStruct((rows, _LANE), out_dtype),
        grid_spec=pltpu.PrefetchScalarGridSpec(
            num_scalar_prefetch=0,
            grid=(grid,),
            in_specs=[smem_spec] + [spec] * len(slabs),
            out_specs=spec,
        ),
        compiler_params=pltpu.CompilerParams(
            dimension_semantics=("parallel",),
            vmem_limit_bytes=vmem_limit,
        ),
        cost_estimate=cost,
    )(delta_arr, *slabs)

    out = out.reshape(-1)
    if pad:
        out = out[:total]
    return out.reshape(orig_shape)


# --------------------------------------------------------------------------- #
# Pure-JAX reference (mirrors the PyTorch module, in f32)
# --------------------------------------------------------------------------- #
def _reference(x, y, weights, base_delta):
    x = x.astype(jnp.float32)
    y = y.astype(jnp.float32)
    if weights is None:
        weights = jnp.ones_like(x)
    w = jnp.broadcast_to(jnp.asarray(weights).astype(jnp.float32), x.shape)
    r = jnp.abs(x - y)
    d = w * base_delta
    return jnp.where(r < d, 0.5 * r ** 2, d * (r - 0.5 * d))


if __name__ == "__main__":
    key = jax.random.PRNGKey(0)
    k1, k2, k3 = jax.random.split(key, 3)

    B, C, H, W = 2, 4, 16, 16
    base_delta = 0.5

    x = jax.random.normal(k1, (B, C, H, W), dtype=jnp.float32)
    y = jax.random.normal(k2, (B, C, H, W), dtype=jnp.float32)
    weights = jax.random.uniform(k3, (B, C, H, W), dtype=jnp.float32,
                                 minval=0.5, maxval=1.5)

    # 1) explicit weights, f32, aligned size (pure reshape, grid=2)
    out = jax.block_until_ready(modified_huber(x, y, weights, base_delta=base_delta))
    ref = _reference(x, y, weights, base_delta)
    assert out.shape == x.shape and out.dtype == x.dtype
    assert jnp.allclose(out, ref, atol=1e-6, rtol=1e-6)

    # 2) weights=None path (2-input kernel, no ones tensor materialized)
    out2 = jax.block_until_ready(modified_huber(x, y, None, base_delta=base_delta))
    ref2 = _reference(x, y, None, base_delta)
    assert jnp.allclose(out2, ref2, atol=1e-6, rtol=1e-6)

    # 3) bf16 inputs stay bf16 end-to-end (loose tolerance vs f32 reference)
    xb, yb, wb = x.astype(jnp.bfloat16), y.astype(jnp.bfloat16), weights.astype(jnp.bfloat16)
    out3 = jax.block_until_ready(modified_huber(xb, yb, wb, base_delta=base_delta))
    assert out3.dtype == jnp.bfloat16
    assert jnp.allclose(out3.astype(jnp.float32),
                        _reference(xb, yb, wb, base_delta), atol=2e-2, rtol=2e-2)

    # 4) ragged last tile: 20 rows split into 16 + (partial) 4 across grid=2
    xp = jax.random.normal(k1, (4, 5, 128), dtype=jnp.float32)
    yp = jax.random.normal(k2, (4, 5, 128), dtype=jnp.float32)
    out4 = jax.block_until_ready(modified_huber(xp, yp, None, base_delta=base_delta))
    assert jnp.allclose(out4, _reference(xp, yp, None, base_delta), atol=1e-6, rtol=1e-6)

    # 5) non-multiple-of-128 total exercises the (<128-element) pad path
    xs = jax.random.normal(k1, (3, 5, 7), dtype=jnp.float32)
    ys = jax.random.normal(k2, (3, 5, 7), dtype=jnp.float32)
    out5 = jax.block_until_ready(modified_huber(xs, ys, None, base_delta=base_delta))
    assert jnp.allclose(out5, _reference(xs, ys, None, base_delta), atol=1e-6, rtol=1e-6)

    # 6) scalar weights fold into delta (no third stream), different delta value
    out6 = jax.block_until_ready(modified_huber(x, y, jnp.float32(1.3), base_delta=0.7))
    assert jnp.allclose(out6, _reference(x, y, jnp.full_like(x, 1.3), 0.7),
                        atol=1e-6, rtol=1e-6)

    print("KERNEL_OK")
</pallas_src>

<mosaic_0001>
module attributes {stable_mosaic.version = 11 : i64} {
  func.func @_mh_kernel_weighted(%arg0: i32, %arg1: memref<1xf32, #tpu.memory_space<smem>>, %arg2: memref<8x128xf32, #tpu.memory_space<vmem>>, %arg3: memref<8x128xf32, #tpu.memory_space<vmem>>, %arg4: memref<8x128xf32, #tpu.memory_space<vmem>>, %arg5: memref<8x128xf32, #tpu.memory_space<vmem>>) attributes {dimension_semantics = [#tpu.dimension_semantics<parallel>], iteration_bounds = array<i64: 2>, scalar_prefetch = 0 : i64, scratch_operands = 0 : i64, tpu.core_type = #tpu.core_type<tc>, window_params = [{transform_indices = @transform_0, window_bounds = array<i64: 1>}, {transform_indices = @transform_1, window_bounds = array<i64: 8, 128>}, {transform_indices = @transform_2, window_bounds = array<i64: 8, 128>}, {transform_indices = @transform_3, window_bounds = array<i64: 8, 128>}, {transform_indices = @transform_4, window_bounds = array<i64: 8, 128>}]} {
    %c0 = arith.constant 0 : index
    %0 = memref.load %arg1[%c0] : memref<1xf32, #tpu.memory_space<smem>>
    %c0_0 = arith.constant 0 : index
    %c0_1 = arith.constant 0 : index
    %1 = vector.load %arg2[%c0_0, %c0_1] : memref<8x128xf32, #tpu.memory_space<vmem>>, vector<8x128xf32>
    %c0_2 = arith.constant 0 : index
    %c0_3 = arith.constant 0 : index
    %2 = vector.load %arg3[%c0_2, %c0_3] : memref<8x128xf32, #tpu.memory_space<vmem>>, vector<8x128xf32>
    %c0_4 = arith.constant 0 : index
    %c0_5 = arith.constant 0 : index
    %3 = vector.load %arg4[%c0_4, %c0_5] : memref<8x128xf32, #tpu.memory_space<vmem>>, vector<8x128xf32>
    %4 = arith.subf %1, %2 : vector<8x128xf32>
    %5 = math.absf %4 : vector<8x128xf32>
    %6 = vector.broadcast %0 : f32 to vector<8x128xf32>
    %7 = arith.mulf %3, %6 : vector<8x128xf32>
    %8 = arith.cmpf olt, %5, %7 : vector<8x128xf32>
    %cst = arith.constant 5.000000e-01 : f32
    %9 = vector.broadcast %cst : f32 to vector<8x128xf32>
    %10 = arith.mulf %9, %5 : vector<8x128xf32>
    %11 = arith.mulf %10, %5 : vector<8x128xf32>
    %cst_6 = arith.constant 5.000000e-01 : f32
    %12 = vector.broadcast %cst_6 : f32 to vector<8x128xf32>
    %13 = arith.mulf %12, %7 : vector<8x128xf32>
    %14 = arith.subf %5, %13 : vector<8x128xf32>
    %15 = arith.mulf %7, %14 : vector<8x128xf32>
    %16 = arith.select %8, %11, %15 : vector<8x128xi1>, vector<8x128xf32>
    %c0_7 = arith.constant 0 : index
    %c0_8 = arith.constant 0 : index
    %17 = vector.load %arg5[%c0_7, %c0_8] : memref<8x128xf32, #tpu.memory_space<vmem>>, vector<8x128xf32>
    tpu.vector_store %arg5[%c0_7, %c0_8], %16 {strides = array<i32>} : memref<8x128xf32, #tpu.memory_space<vmem>>, vector<8x128xf32>,
    return
  }
  func.func @transform_0(%arg0: i32) -> i32 {
    %c0_i32 = arith.constant 0 : i32
    %c0_i32_0 = arith.constant 0 : i32
    return %c0_i32 : i32
  }
  func.func @transform_1(%arg0: i32) -> (i32, i32) {
    %c0_i32 = arith.constant 0 : i32
    %c0_i32_0 = arith.constant 0 : i32
    return %arg0, %c0_i32 : i32, i32
  }
  func.func @transform_2(%arg0: i32) -> (i32, i32) {
    %c0_i32 = arith.constant 0 : i32
    %c0_i32_0 = arith.constant 0 : i32
    return %arg0, %c0_i32 : i32, i32
  }
  func.func @transform_3(%arg0: i32) -> (i32, i32) {
    %c0_i32 = arith.constant 0 : i32
    %c0_i32_0 = arith.constant 0 : i32
    return %arg0, %c0_i32 : i32, i32
  }
  func.func @transform_4(%arg0: i32) -> (i32, i32) {
    %c0_i32 = arith.constant 0 : i32
    %c0_i32_0 = arith.constant 0 : i32
    return %arg0, %c0_i32 : i32, i32
  }
}

</mosaic_0001>

<bundles_post_ra>
// kernel: tpu_custom_call.1
= control target key start
LH: loop header
LB: loop body
LE: loop exit
PB: predicated region body
PF: predicated region fallthrough
CT: control target
= control target key end

     0   :  { %s931_s0 = inlined_call_operand.<no memory space> [shape: f32[1], index: 0, kind: input, shape index: {}]   ;;  %s932_s1 = inlined_call_operand.hbm [shape: f32[16,128], index: 1, kind: input, shape index: {}]   ;;  %s933_s2 = inlined_call_operand.hbm [shape: f32[16,128], index: 2, kind: input, shape index: {}]   ;;  %s934_s3 = inlined_call_operand.hbm [shape: f32[16,128], index: 3, kind: input, shape index: {}]   ;;  %s935_s4 = inlined_call_operand.hbm [shape: f32[16,128], index: 4, kind: output, shape index: {}]  }
   0x1   :  { %940 = sst [smem:[#allocation13_spill]] %s933_s2 }
   0x2   :  { %9 = sst [smem:[#allocation2]] %s931_s0 }
   0x3   :  { %10 = vsyncpa [#allocation4], 0 }
   0x4   :  { %12 = vsyncpa [#allocation4 + $0x1], 0 }
   0x5   :  { %13 = vsyncpa [#allocation7], 0 }
   0x6   :  { %15 = vsyncpa [#allocation7 + $0x1], 0 }
   0x7   :  { %16 = vsyncpa [#allocation5], 0 }
   0x8   :  { %18 = vsyncpa [#allocation5 + $0x1], 0  ;;  %s696_s17 = smov 0   ;;  %s698_s18 = smov 0  }
   0x9   :  { %s700_s19 = smov 0   ;;  %s702_s20 = smov 0  }
   0xa LB: > { %s717_s0 = sadd.s32 4294967295, %s662_s20   ;;  %s428_s21 = sadd.s32 4294967294, %s662_s20   ;;  %s662_s20 = sphi %s702_s20, %s959_s20   ;;  %s658_s19 = sphi %s700_s19, %s958_s19   ;;  %s654_s18 = sphi %s698_s18, %s957_s18   ;;  %s650_s17 = sphi %s696_s17, %s956_s17  }
   0xb   : > { %s721_s22 = sadd.s32 1, %s662_s20   ;;  %s52_s23 = sadd.s32 1, %s658_s19 }
   0xc   : > { %s49_s24 = ssub.s32 %s662_s20, %s721_s22  ;;  %p59_p0 = scmp.ne.s32.totalorder %s658_s19, %s654_s18 }
   0xd   : > { %p50_p1 = scmp.eq.s32.totalorder %s49_s24, 0  ;;  %p60_p2 = scmp.eq.s32.totalorder %s662_s20, 0 }
   0xe   : > { %p65_p3 = scmp.ne.s32.totalorder %s654_s18, %s650_s17  ;;  %p66_p4 = scmp.eq.s32.totalorder %s717_s0, 0 }
   0xf   : > { %s733_s25 = scalar_select %p50_p1, %s658_s19, %s52_s23  }
  0x10   : > { %p61_p5 = por %p60_p2, %p59_p0  ;;  %p735_p6 = por %p66_p4, %p65_p3 }
  0x11   : > { %p141_p7 = scmp.eq.s32.totalorder %s717_s0, 1  ;;  %p147_p8 = scmp.eq.s32.totalorder %s428_s21, 1 }
  0x12   : > { %s941_s26 = scalar_select %p735_p6, 1, 0 }
  0x13   : > { %p468_p10 = scmp.lt.s32.totalorder %s662_s20, 2  ;;  %p742_p11 = por %p141_p7, %p59_p0 }
  0x14   : > { %p746_p12 = por %p147_p8, %p65_p3  ;;  %s170_s29 = sand.u32 1, %s658_s19  }
  0x15   : > { %s942_s27 = scalar_select %p742_p11, 1, 0 }
  0x16   : > { %s943_s28 = scalar_select %p746_p12, 1, 0 }
  0x17   : > { %s752_s30 = sshll.u32 %s662_s20, 7  ;;  %s756_s5 = sshll.u32 %s170_s29, 3 }
  0x18   : > { %p758_p13 = pnand %p468_p10, %p61_p5  ;;  %s188_s7 = sand.u32 1, %s662_s20  }
  0x19   : > { %s945_s2 = sld [smem:[#allocation13_spill]]  ;;  %s192_s11 = scalar_lea.vmem [#allocation6], %s756_s5 }
  0x1a   : > { %s944_s6 = scalar_select %p758_p13, 1, 0 }
  0x1b   : > { %s199_s12 = sshll.u32 %s192_s11, 4  ;;  %s773_s13 = scalar_lea.sflag [#allocation7], %s188_s7  ;;  %s770_s12 = int_to_ptr.vmem [resolvable:$true] %s199_s12 }
  0x1c   : > { %p779_p2 = pneg %p758_p13 }
  0x1f   : > { %s767_s10 = scalar_lea.hbm %s945_s2, %s752_s30  ;;  %s507_s23 = scalar_lea.hbm %s945_s2, 256 }
  0x20   : > { %s502_s14 = scalar_lea.hbm %s767_s10, 128  ;;  %p508_p5 = scmp.lt.u32.totalorder %s767_s10, %s945_s2 }
  0x21   : > { %p503_p1 = scmp.ne.s32.totalorder %s767_s10, %s502_s14  ;;  %p509_p7 = scmp.lt.u32.totalorder %s507_s23, %s502_s14 }
  0x22   : > { %p511_p10 = scmp.lt.u32.totalorder %s502_s14, %s767_s10 }
  0x23   : > { %p505_p3 = pnand %p779_p2, %p503_p1  ;;  %p510_p8 = por %p509_p7, %p508_p5 }
  0x25   : > { %p506_p4 = pneg %p505_p3  ;;  %p512_p9 = por %p511_p10, %p510_p8 }
  0x27   : > { %p513_p0 = pnand %p512_p9, %p506_p4 }
  0x29   : > { %516 = shalt.err (!%p513_p0)
}
  0x2a   : > { %s517_s7 = scalar_lea.vmem %s770_s12, 128  ;;  %s664_s9 = smov [#allocation6]  }
  0x2b   : > { %p518_p1 = scmp.ne.s32.totalorder %s770_s12, %s517_s7  ;;  %s522_s11 = sshll.u32 %s664_s9, 4  ;;  %s523_s11 = int_to_ptr.vmem [resolvable:$false] %s522_s11 }
  0x2c   : > { %s524_s16 = scalar_lea.vmem %s523_s11, 256  ;;  %p525_p11 = scmp.lt.s32.totalorder %s770_s12, %s523_s11 }
  0x2d   : > { %p520_p3 = pnand %p518_p1, %p779_p2  ;;  %p526_p6 = scmp.lt.s32.totalorder %s524_s16, %s517_s7 }
  0x2f   : > { %p521_p12 = pneg %p520_p3  ;;  %p527_p5 = por %p526_p6, %p525_p11 }
  0x31   : > { %p528_p7 = pnand %p527_p5, %p521_p12 }
  0x33   : > { %531 = shalt.err (!%p528_p7)
}
  0x34   : > { %460 = dma.hbm_to_vmem [thread:$0]  (!%p758_p13), %s767_s10, 128, %s770_s12, %s773_s13  }
  0x35   : > { %p222_p9 = scmp.lt.s32.totalorder %s662_s20, 3  ;;  %s808_s23 = scalar_lea.hbm %s932_s1, %s752_s30 }
  0x36   : > { %p947_p6 = scmp.ge.s32.totalorder %s662_s20, 1  ;;  %s174_s8 = scalar_lea.vmem [#allocation3], %s756_s5 }
  0x37   : > { %s181_s7 = sshll.u32 %s174_s8, 4  ;;  %s171_s10 = scalar_lea.sflag [#allocation4], %s170_s29  ;;  %s182_s7 = int_to_ptr.vmem [resolvable:$true] %s181_s7 }
  0x38   : > { %p812_p11 = pnand %p947_p6, %p222_p9  ;;  %s532_s12 = scalar_lea.hbm %s808_s23, 128 }
  0x39   : > { %p533_p12 = scmp.ne.s32.totalorder %s808_s23, %s532_s12  ;;  %s537_s16 = scalar_lea.hbm %s932_s1, 256 }
  0x3a   : > { %s948_s24 = scalar_select %p812_p11, 1, 0 }
  0x3b   : > { %p535_p0 = pnand %p533_p12, %p779_p2  ;;  %p538_p8 = scmp.lt.u32.totalorder %s808_s23, %s932_s1 }
  0x3c   : > { %p539_p10 = scmp.lt.u32.totalorder %s537_s16, %s532_s12  ;;  %p541_p3 = scmp.lt.u32.totalorder %s532_s12, %s808_s23 }
  0x3d   : > { %p536_p4 = pneg %p535_p0 }
  0x3e   : > { %p540_p1 = por %p539_p10, %p538_p8 }
  0x40   : > { %p542_p5 = por %p541_p3, %p540_p1 }
  0x42   : > { %p543_p7 = pnand %p542_p5, %p536_p4 }
  0x44   : > { %546 = shalt.err (!%p543_p7)
}
  0x45   : > { %s547_s29 = scalar_lea.vmem %s182_s7, 128  ;;  %s665_s8 = smov [#allocation3]  }
  0x46   : > { %p548_p9 = scmp.ne.s32.totalorder %s182_s7, %s547_s29  ;;  %s552_s2 = sshll.u32 %s665_s8, 4  ;;  %s553_s2 = int_to_ptr.vmem [resolvable:$false] %s552_s2 }
  0x47   : > { %s554_s9 = scalar_lea.vmem %s553_s2, 256  ;;  %p555_p0 = scmp.lt.s32.totalorder %s182_s7, %s553_s2 }
  0x48   : > { %p550_p6 = pnand %p548_p9, %p779_p2  ;;  %p556_p11 = scmp.lt.s32.totalorder %s554_s9, %s547_s29 }
  0x4a   : > { %p551_p12 = pneg %p550_p6  ;;  %p557_p13 = por %p556_p11, %p555_p0 }
  0x4c   : > { %p558_p8 = pnand %p557_p13, %p551_p12 }
  0x4e   : > { %561 = shalt.err (!%p558_p8)
}
  0x4f   : > { %p949_p10 = scmp.ne.s32.totalorder %s944_s6, 0  ;;  %s840_s16 = scalar_lea.hbm %s934_s3, %s752_s30 }
  0x50   : > { %s210_s2 = scalar_lea.vmem [#allocation8], %s756_s5  ;;  %s562_s21 = scalar_lea.hbm %s840_s16, 128 }
  0x51   : > { %457 = dma.hbm_to_vmem [thread:$0]  (!%p949_p10), %s808_s23, 128, %s182_s7, %s171_s10  }
  0x52   : > { %s217_s14 = sshll.u32 %s210_s2, 4  ;;  %p563_p13 = scmp.ne.s32.totalorder %s840_s16, %s562_s21  ;;  %s218_s14 = int_to_ptr.vmem [resolvable:$true] %s217_s14 }
  0x53   : > { %s567_s23 = scalar_lea.hbm %s934_s3, 256  ;;  %p568_p1 = scmp.lt.u32.totalorder %s840_s16, %s934_s3 }
  0x54   : > { %p565_p11 = pnand %p563_p13, %p779_p2  ;;  %p569_p3 = scmp.lt.u32.totalorder %s567_s23, %s562_s21 }
  0x55   : > { %p571_p7 = scmp.lt.u32.totalorder %s562_s21, %s840_s16 }
  0x56   : > { %p566_p4 = pneg %p565_p11  ;;  %p570_p5 = por %p569_p3, %p568_p1 }
  0x58   : > { %p572_p9 = por %p571_p7, %p570_p5 }
  0x5a   : > { %p573_p6 = pnand %p572_p9, %p566_p4 }
  0x5c   : > { %576 = shalt.err (!%p573_p6)
}
  0x5d   : > { %s577_s30 = scalar_lea.vmem %s218_s14, 128  ;;  %s666_s5 = smov [#allocation8]  }
  0x5e   : > { %p578_p12 = scmp.ne.s32.totalorder %s218_s14, %s577_s30  ;;  %s582_s9 = sshll.u32 %s666_s5, 4  ;;  %s583_s9 = int_to_ptr.vmem [resolvable:$false] %s582_s9 }
  0x5f   : > { %s584_s12 = scalar_lea.vmem %s583_s9, 256  ;;  %p585_p13 = scmp.lt.s32.totalorder %s218_s14, %s583_s9 }
  0x60   : > { %p580_p0 = pnand %p578_p12, %p779_p2  ;;  %p586_p11 = scmp.lt.s32.totalorder %s584_s12, %s577_s30 }
  0x62   : > { %p581_p8 = pneg %p580_p0  ;;  %p587_p10 = por %p586_p11, %p585_p13 }
  0x64   : > { %p588_p1 = pnand %p587_p10, %p581_p8 }
  0x66   : > { %591 = shalt.err (!%p588_p1)
}
  0x67   : > { %p950_p3 = scmp.ne.s32.totalorder %s944_s6, 0  ;;  %p951_p4 = scmp.ne.s32.totalorder %s948_s24, 0 }
  0x68   : > { %s864_s15 = sand.u32 (!%p951_p4), 1, %s654_s18   ;;  %p952_p2 = scmp.ne.s32.totalorder (!%p951_p4), %s941_s26, 0 }
  0x69   : > { %463 = dma.hbm_to_vmem [thread:$0]  (!%p950_p3), %s840_s16, 128, %s218_s14, %s773_s13  }
  0x6a   : > { %226 = sbr.rel (%p951_p4) target bundleno = 147 (0x93), region = 36  ;;  %s867_s11 = sshll.u32 (!%p951_p4), %s864_s15, 3 }
  0x6b   : > { %s229_s2 = scalar_lea.sflag (!%p951_p4), [#allocation4], %s864_s15  ;;  %s232_s21 = scalar_lea.vmem (!%p951_p4), [#allocation3], %s867_s11 }
  0x71   : > { %637 = dma.done.wait (%p952_p2), %s229_s2, 128  }
  0x72   : > { %639 = vsyncadd (%p952_p2), %s229_s2, 4294967168  ;;  %s237_s6 = sand.u32 1, %s717_s0   ;;  %s241_s24 = scalar_lea.vmem [#allocation6], %s867_s11 }
  0x73   : > { %s238_s13 = scalar_lea.sflag [#allocation7], %s237_s6 }
  0x74   : > { %641 = dma.done.wait (%p952_p2), %s238_s13, 256  }
  0x75   : > { %643 = vsyncadd (%p952_p2), %s238_s13, 4294967040  ;;  %s285_s16 = sld [smem:[#allocation2]]  ;;  %v286_v0 = vld [vmem:[%s232_s21] sm:$0xff]  ;;  %v287_v1 = vld [vmem:[%s241_s24] sm:$0xff]  ;;  %s250_s14 = scalar_lea.vmem [#allocation8], %s867_s11 }
  0x76   : > { %v288_v2 = vld [vmem:[%s250_s14] sm:$0xff]  ;;  %v289_v4 = vsub.f32 %v286_v0, %v287_v1  ;;  %s284_s29 = scalar_lea.vmem [#allocation9], %s867_s11  ;;  %s443_s26 = sshll.u32 %s717_s0, 7 }
  0x77   : > { %s315_s8 = sshll.u32 %s284_s29, 4  ;;  %s889_s10 = scalar_lea.hbm %s935_s4, %s443_s26  ;;  %s884_s8 = int_to_ptr.vmem [resolvable:$true] %s315_s8 }
  0x78   : > { %v290_v6 = vand.u32 2147483647, %v289_v4  ;;  %s302_s30 = scalar_lea.sflag [#allocation5], %s864_s15  ;;  %s592_s5 = scalar_lea.vmem %s884_s8, 128 }
  0x79   : > { %p593_p10 = scmp.ne.s32.totalorder %s884_s8, %s592_s5  ;;  %p953_p5 = scmp.ne.s32.totalorder %s942_s27, 0 }
  0x7a   : > { %v294_v8 = vmul.f32 0.5, %v290_v6  ;;  %s667_s0 = smov [#allocation9]  }
  0x7b   : > { %v291_v3 = vstv %s285_s16  ;;  %p594_p7 = pnand %p593_p10, %p953_p5  ;;  %s596_s9 = sshll.u32 %s667_s0, 4  ;;  %s597_s9 = int_to_ptr.vmem [resolvable:$false] %s596_s9 }
  0x7c   : > { %v292_v5 = vmul.f32 %v291_v3, %v288_v2  ;;  %v295_v10 = vmul.f32 %v294_v8, %v290_v6  ;;  %s598_s12 = scalar_lea.vmem %s597_s9, 256  ;;  %p599_p6 = scmp.lt.s32.totalorder %s884_s8, %s597_s9 }
  0x7d   : > { %p595_p9 = pneg %p594_p7  ;;  %p600_p12 = scmp.lt.s32.totalorder %s598_s12, %s592_s5 }
  0x7e   : > { %v296_v7 = vmul.f32 0.5, %v292_v5  ;;  %vm293_vm0 = vcmp.lt.f32.partialorder %v290_v6, %v292_v5 }
  0x7f   : > { %p601_p0 = por %p600_p12, %p599_p6 }
  0x80   : > { %v297_v9 = vsub.f32 %v290_v6, %v296_v7 }
  0x81   : > { %p602_p8 = pnand %p601_p0, %p595_p9 }
  0x82   : > { %v298_v11 = vmul.f32 %v297_v9, %v292_v5 }
  0x84   : > { %v299_v12 = vsel %vm293_vm0, %v295_v10, %v298_v11 }
  0x85   : > { %300 = vst [vmem:[%s284_s29] sm:$0xff] %v299_v12 }
  0x86   : > { %605 = shalt.err (!%p602_p8)
}
  0x87   : > { %s606_s15 = scalar_lea.hbm %s889_s10, 128  ;;  %s610_s21 = scalar_lea.hbm %s935_s4, 256 }
  0x88   : > { %p607_p13 = scmp.ne.s32.totalorder %s889_s10, %s606_s15  ;;  %p611_p3 = scmp.lt.u32.totalorder %s889_s10, %s935_s4 }
  0x89   : > { %p612_p4 = scmp.lt.u32.totalorder %s610_s21, %s606_s15  ;;  %p614_p10 = scmp.lt.u32.totalorder %s606_s15, %s889_s10 }
  0x8a   : > { %p608_p11 = pnand %p607_p13, %p953_p5 }
  0x8b   : > { %p613_p2 = por %p612_p4, %p611_p3 }
  0x8c   : > { %p609_p1 = pneg %p608_p11 }
  0x8d   : > { %p615_p7 = por %p614_p10, %p613_p2 }
  0x8f   : > { %p616_p9 = pnand %p615_p7, %p609_p1 }
  0x91   : > { %619 = shalt.err (!%p616_p9)
}
  0x92   : > { %452 = dma.vmem_to_hbm [thread:$0]  (%p953_p5), %s884_s8, 128, %s889_s10, %s302_s30  }
  0x93 PF: > { %s327_s24 = sand.u32 1, %s650_s17   ;;  %p954_p6 = scmp.ne.s32.totalorder %s943_s28, 0 }
  0x94   : > { %p955_p12 = scmp.ge.s32.totalorder %s662_s20, 2  ;;  %s328_s16 = scalar_lea.sflag [#allocation5], %s327_s24 }
  0x96   : > { %p465_p0 = pnand %p955_p12, %p954_p6 }
  0x98   : > { %645 = dma.done.wait (!%p465_p0), %s328_s16, 128  }
  0x99   : > { %647 = vsyncadd (!%p465_p0), %s328_s16, 4294967168  ;;  %p21_p8 = scmp.ge.s32.totalorder %s721_s22, 4   ;;  %s956_s17 = smov %s654_s18 }
  0x9a   : > { %s957_s18 = smov %s658_s19  ;;  %s958_s19 = smov %s733_s25 }
  0x9b   : > { %s959_s20 = smov %s721_s22  ;;  %23 = sbr.rel (!%p21_p8) target bundleno = 10 (0xa), region = 105 }
  0xa2   :  { %333 = vsyncpa [#allocation4], 1 }
  0xa3   :  { %335 = vsyncpa [#allocation4 + $0x1], 1 }
  0xa4   :  { %336 = vsyncpa [#allocation7], 1 }
  0xa5   :  { %338 = vsyncpa [#allocation7 + $0x1], 1 }
  0xa6   :  { %339 = vsyncpa [#allocation5], 1 }
  0xa7   :  { %341 = vsyncpa [#allocation5 + $0x1], 1 }

</bundles_post_ra>
